<compile_context>
chip_gen: v6e
topology: v6e:2x2x1
jax: 0.10.0
libtpu: 0.0.40
codegen_flags: <defaults>
</compile_context>

<pallas_src>
import jax
import jax.numpy as jnp
from jax.experimental import pallas as pl
from jax.experimental.pallas import tpu as pltpu


# --------------------------------------------------------------------------- #
# Kernels
# --------------------------------------------------------------------------- #

def ffn_resident_kernel(x_ref, w1_ref, b1_ref, w2_ref, b2_ref, o_ref):
    """Whole weight matrices resident in VMEM; grid = (row tiles,)."""
    x = x_ref[...].astype(w1_ref.dtype)
    h = jnp.dot(x, w1_ref[...], preferred_element_type=jnp.float32) + b1_ref[...]
    h = jnp.maximum(h, 0.0)                       # ReLU; dropout = identity (eval)
    out = jnp.dot(h.astype(w2_ref.dtype), w2_ref[...],
                  preferred_element_type=jnp.float32) + b2_ref[...]
    o_ref[...] = out.astype(o_ref.dtype)


def ffn_chunked_oacc_kernel(x_ref, w1_ref, b1_ref, w2_ref, b2_ref, o_ref):
    """d_ff streamed in chunks; f32 output block doubles as the accumulator."""
    j = pl.program_id(1)
    x = x_ref[...].astype(w1_ref.dtype)
    h = jnp.dot(x, w1_ref[...], preferred_element_type=jnp.float32) + b1_ref[...]
    h = jnp.maximum(h, 0.0)
    partial = jnp.dot(h.astype(w2_ref.dtype), w2_ref[...],
                      preferred_element_type=jnp.float32)

    @pl.when(j == 0)
    def _():                                  # first chunk: write, no zero-init pass
        o_ref[...] = partial

    @pl.when(j > 0)
    def _():
        o_ref[...] += partial

    @pl.when(j == pl.num_programs(1) - 1)
    def _():
        o_ref[...] += b2_ref[...].astype(jnp.float32)


def ffn_chunked_scratch_kernel(x_ref, w1_ref, b1_ref, w2_ref, b2_ref, o_ref, acc_ref):
    """d_ff streamed in chunks; f32 VMEM scratch accumulator (non-f32 outputs)."""
    j = pl.program_id(1)
    x = x_ref[...].astype(w1_ref.dtype)
    h = jnp.dot(x, w1_ref[...], preferred_element_type=jnp.float32) + b1_ref[...]
    h = jnp.maximum(h, 0.0)
    partial = jnp.dot(h.astype(w2_ref.dtype), w2_ref[...],
                      preferred_element_type=jnp.float32)

    @pl.when(j == 0)
    def _():                                  # write, not zero-init + RMW
        acc_ref[...] = partial

    @pl.when(j > 0)
    def _():
        acc_ref[...] += partial

    @pl.when(j == pl.num_programs(1) - 1)
    def _():
        o_ref[...] = (acc_ref[...] + b2_ref[...].astype(jnp.float32)).astype(o_ref.dtype)


# --------------------------------------------------------------------------- #
# Sizing helpers (generation-aware)
# --------------------------------------------------------------------------- #

def _round_up(x, m):
    return ((x + m - 1) // m) * m


def _sublane_pack(dtype):
    # 8 rows for f32, 16 for bf16, 32 for int8 — sub-32-bit dtypes pack sublanes.
    return max(8, 32 // jnp.dtype(dtype).itemsize)


def _vmem_capacity_bytes():
    try:
        return int(pltpu.get_tpu_info().vmem_capacity_bytes)
    except Exception:
        return 64 << 20            # conservative (v7x-sized) fallback


def _resident_bytes(tm, d_model, d_ff, w_isz, x_isz, o_isz):
    w = 2 * 2 * d_model * d_ff * w_isz            # w1 + w2, conservatively 2-buffered
    b = 2 * (d_ff + d_model) * w_isz
    xio = 2 * tm * d_model * (x_isz + o_isz)      # double-buffered in/out row tiles
    h = tm * d_ff * 4                             # materialized f32 intermediate
    return w + b + xio + h


def _chunked_bytes(tm, tf, d_model, w_isz, x_isz, o_isz, use_scratch):
    w = 2 * 2 * d_model * tf * w_isz              # streaming w1/w2 chunks, 2-buffered
    b = 2 * (tf + d_model) * w_isz
    xio = 2 * tm * d_model * (x_isz + o_isz)
    acc = tm * d_model * 4 if use_scratch else 0
    h = tm * tf * 4
    return w + b + xio + acc + h


# --------------------------------------------------------------------------- #
# Wrapper
# --------------------------------------------------------------------------- #

def feed_forward_block(x, w1_t, b1, w2_t, b2, *, tm=None, tf=None,
                       vmem_limit_bytes=None, force_chunked=False):
    """Fused FFN.

    x:    (..., d_model)
    w1_t: (d_model, d_ff)  -- linear1 weight, pre-transposed (torch weight.T)
    b1:   (d_ff,)
    w2_t: (d_ff, d_model)  -- linear2 weight, pre-transposed
    b2:   (d_model,)
    Weights may be bf16 (recommended on v6e/v7x); accumulation is always f32.
    """
    *lead, d_model = x.shape
    d_ff = w1_t.shape[1]
    assert w1_t.shape == (d_model, d_ff)
    assert w2_t.shape == (d_ff, d_model)
    assert b1.shape == (d_ff,) and b2.shape == (d_model,)

    out_dtype = x.dtype
    M = 1
    for s in lead:
        M *= s
    x2d = x.reshape(M, d_model)

    w_isz = jnp.dtype(w1_t.dtype).itemsize
    x_isz = jnp.dtype(x.dtype).itemsize
    o_isz = jnp.dtype(out_dtype).itemsize
    sub = max(_sublane_pack(x.dtype), _sublane_pack(out_dtype))

    # ---- VMEM budget from the actual chip (64 MiB v7x, 128 MiB v5e/v6e) ----
    vmem_cap = _vmem_capacity_bytes()
    if vmem_limit_bytes is None:
        vmem_limit_bytes = min(int(0.78 * vmem_cap), vmem_cap - (8 << 20))
    tile_budget = int(0.85 * vmem_limit_bytes)    # headroom for Mosaic internal scratch

    # ---- row tile -----------------------------------------------------------
    if tm is None:
        tm_target = 512 if w_isz <= 2 else 256    # bf16 weights afford taller tiles
        if M >= tm_target:
            tm = tm_target
        elif M >= 128:
            tm = _round_up(M, 128)                # keep MXU rows full
        else:
            tm = _round_up(M, sub)                # dtype sublane pack (8 f32 / 16 bf16)
    tm = max(sub, _round_up(tm, sub))

    # ---- resident-weights fast path (no d_ff streaming, no accumulator) -----
    use_resident = (not force_chunked) and (
        _resident_bytes(tm, d_model, d_ff, w_isz, x_isz, o_isz) <= tile_budget)

    if use_resident and M >= 256 and _round_up(M, tm) // tm == 1:
        # Dual-TC parts (v7x): give the "parallel" i axis >= 2 tiles.  Free here
        # because resident weights are not re-streamed per row tile.
        tm = _round_up((M + 1) // 2, 128)

    if not use_resident:
        # ---- chunked path: stream d_ff in VMEM-bounded pieces ---------------
        use_scratch = out_dtype != jnp.float32
        if tf is None:
            tf = 512 if w_isz <= 2 else 256
        tf = max(128, (min(tf, _round_up(d_ff, 128)) // 128) * 128)
        # Shrink tf, then tm, until the chunk working set fits the budget.
        while tf > 128 and _chunked_bytes(tm, tf, d_model, w_isz, x_isz, o_isz,
                                          use_scratch) > tile_budget:
            tf -= 128
        while tm > sub and _chunked_bytes(tm, tf, d_model, w_isz, x_isz, o_isz,
                                          use_scratch) > tile_budget:
            tm = max(sub, _round_up(tm // 2, sub))
        # Prefer a 128-aligned divisor of d_ff (no padding); otherwise pad d_ff.
        t = tf
        while t >= 128 and d_ff % t:
            t -= 128
        if t >= 128:
            tf = t
            d_ff_pad = d_ff
        else:
            d_ff_pad = _round_up(d_ff, tf)

    # ---- pad rows so M is an exact multiple of tm ---------------------------
    m_pad = _round_up(M, tm)
    if m_pad != M:
        x2d = jnp.pad(x2d, ((0, m_pad - M), (0, 0)))

    b1_2d = b1.reshape(1, d_ff)
    b2_2d = b2.reshape(1, d_model)

    if use_resident:
        grid = (m_pad // tm,)
        out = pl.pallas_call(
            ffn_resident_kernel,
            out_shape=jax.ShapeDtypeStruct((m_pad, d_model), out_dtype),
            grid_spec=pltpu.PrefetchScalarGridSpec(
                num_scalar_prefetch=0,
                grid=grid,
                in_specs=[
                    pl.BlockSpec((tm, d_model), lambda i: (i, 0)),
                    # Constant index maps: weights/biases DMA'd once, stay in VMEM.
                    pl.BlockSpec((d_model, d_ff), lambda i: (0, 0)),
                    pl.BlockSpec((1, d_ff), lambda i: (0, 0)),
                    pl.BlockSpec((d_ff, d_model), lambda i: (0, 0)),
                    pl.BlockSpec((1, d_model), lambda i: (0, 0)),
                ],
                out_specs=pl.BlockSpec((tm, d_model), lambda i: (i, 0)),
            ),
            compiler_params=pltpu.CompilerParams(
                dimension_semantics=("parallel",),
                vmem_limit_bytes=vmem_limit_bytes,
            ),
        )(x2d, w1_t, b1_2d, w2_t, b2_2d)
    else:
        if d_ff_pad != d_ff:
            # Zero padding is exact: relu(0)=0 and padded w2 rows are zero.
            w1_c = jnp.pad(w1_t, ((0, 0), (0, d_ff_pad - d_ff)))
            b1_c = jnp.pad(b1_2d, ((0, 0), (0, d_ff_pad - d_ff)))
            w2_c = jnp.pad(w2_t, ((0, d_ff_pad - d_ff), (0, 0)))
        else:
            w1_c, b1_c, w2_c = w1_t, b1_2d, w2_t

        grid = (m_pad // tm, d_ff_pad // tf)
        if use_scratch:
            kernel = ffn_chunked_scratch_kernel
            scratch = [pltpu.VMEM((tm, d_model), jnp.float32)]
        else:
            kernel = ffn_chunked_oacc_kernel       # f32 output is the accumulator
            scratch = []

        # NOTE: if a profile shows exposed weight DMA on v6e, the w1/w2 specs can
        # take pipeline_mode=pl.Buffered(3) (128 MiB VMEM has room); not on v7x.
        out = pl.pallas_call(
            kernel,
            out_shape=jax.ShapeDtypeStruct((m_pad, d_model), out_dtype),
            grid_spec=pltpu.PrefetchScalarGridSpec(
                num_scalar_prefetch=0,
                grid=grid,
                in_specs=[
                    # x tile: constant across j, not re-DMA'd per d_ff chunk.
                    pl.BlockSpec((tm, d_model), lambda i, j: (i, 0)),
                    # Streaming weight/bias chunks along the d_ff axis.
                    pl.BlockSpec((d_model, tf), lambda i, j: (0, j)),
                    pl.BlockSpec((1, tf), lambda i, j: (0, j)),
                    pl.BlockSpec((tf, d_model), lambda i, j: (j, 0)),
                    pl.BlockSpec((1, d_model), lambda i, j: (0, 0)),
                ],
                out_specs=pl.BlockSpec((tm, d_model), lambda i, j: (i, 0)),
                scratch_shapes=scratch,
            ),
            compiler_params=pltpu.CompilerParams(
                dimension_semantics=("parallel", "arbitrary"),
                vmem_limit_bytes=vmem_limit_bytes,
            ),
        )(x2d, w1_c, b1_c, w2_c, b2_2d)

    if m_pad != M:
        out = out[:M]
    return out.reshape(*lead, d_model)


# --------------------------------------------------------------------------- #
# Reference + self-test
# --------------------------------------------------------------------------- #

def reference(x, w1, b1, w2, b2):
    # PyTorch-layout reference: w1 (d_ff, d_model), w2 (d_model, d_ff).
    h = jnp.maximum(jnp.einsum("...d,fd->...f", x, w1) + b1, 0.0)
    return jnp.einsum("...f,df->...d", h, w2) + b2


if __name__ == "__main__":
    key = jax.random.PRNGKey(0)

    # ---- test 1: small f32 (resident-weights path), exact tolerance --------
    batch, seq, d_model, d_ff = 2, 8, 32, 64
    kx, k1, kb1, k2, kb2 = jax.random.split(key, 5)
    x = jax.random.normal(kx, (batch, seq, d_model), dtype=jnp.float32)
    # PyTorch nn.Linear parameter shapes: weight (out, in).
    w1 = jax.random.uniform(k1, (d_ff, d_model), jnp.float32, -0.1, 0.1)
    b1 = jax.random.uniform(kb1, (d_ff,), jnp.float32, -0.1, 0.1)
    w2 = jax.random.uniform(k2, (d_model, d_ff), jnp.float32, -0.1, 0.1)
    b2 = jax.random.uniform(kb2, (d_model,), jnp.float32, -0.1, 0.1)
    w1_t = jnp.asarray(w1.T)   # one-time (parameter-creation-time) transpose
    w2_t = jnp.asarray(w2.T)

    y = jax.block_until_ready(feed_forward_block(x, w1_t, b1, w2_t, b2))
    y_ref = reference(x, w1, b1, w2, b2)
    assert y.shape == (batch, seq, d_model)
    assert jnp.allclose(y, y_ref, atol=1e-5, rtol=1e-5), "f32 resident mismatch"

    # ---- test 2: bf16 weights + activations (MXU-native dtype) -------------
    yb = jax.block_until_ready(
        feed_forward_block(x.astype(jnp.bfloat16),
                           w1_t.astype(jnp.bfloat16), b1.astype(jnp.bfloat16),
                           w2_t.astype(jnp.bfloat16), b2.astype(jnp.bfloat16)))
    assert jnp.allclose(yb.astype(jnp.float32), y_ref, atol=5e-2, rtol=5e-2), \
        "bf16 resident drift too large"

    # ---- test 3: chunked d_ff-streaming path (with d_ff zero-padding) ------
    d_model2, d_ff2, M2 = 128, 320, 96
    kx2, k12, kb12, k22, kb22 = jax.random.split(jax.random.PRNGKey(1), 5)
    x2 = jax.random.normal(kx2, (M2, d_model2), dtype=jnp.float32)
    w1b = jax.random.uniform(k12, (d_ff2, d_model2), jnp.float32, -0.05, 0.05)
    b1b = jax.random.uniform(kb12, (d_ff2,), jnp.float32, -0.05, 0.05)
    w2b = jax.random.uniform(k22, (d_model2, d_ff2), jnp.float32, -0.05, 0.05)
    b2b = jax.random.uniform(kb22, (d_model2,), jnp.float32, -0.05, 0.05)
    y2 = jax.block_until_ready(
        feed_forward_block(x2, jnp.asarray(w1b.T), b1b, jnp.asarray(w2b.T), b2b,
                           tf=128, force_chunked=True))
    y2_ref = reference(x2, w1b, b1b, w2b, b2b)
    assert jnp.allclose(y2, y2_ref, atol=1e-4, rtol=1e-4), "chunked path mismatch"

    print("KERNEL_OK")
</pallas_src>

<mosaic_0001>
module attributes {stable_mosaic.version = 11 : i64} {
  func.func @ffn_resident_kernel(%arg0: i32, %arg1: memref<16x32xf32, #tpu.memory_space<vmem>>, %arg2: memref<32x64xf32, #tpu.memory_space<vmem>>, %arg3: memref<1x64xf32, #tpu.memory_space<vmem>>, %arg4: memref<64x32xf32, #tpu.memory_space<vmem>>, %arg5: memref<1x32xf32, #tpu.memory_space<vmem>>, %arg6: memref<16x32xf32, #tpu.memory_space<vmem>>) attributes {dimension_semantics = [#tpu.dimension_semantics<parallel>], iteration_bounds = array<i64: 1>, scalar_prefetch = 0 : i64, scratch_operands = 0 : i64, tpu.core_type = #tpu.core_type<tc>, window_params = [{transform_indices = @transform_0, window_bounds = array<i64: 16, 32>}, {pipeline_mode = #tpu.pipeline_mode<synchronous>, transform_indices = @transform_1, window_bounds = array<i64: 32, 64>}, {pipeline_mode = #tpu.pipeline_mode<synchronous>, transform_indices = @transform_2, window_bounds = array<i64: 1, 64>}, {pipeline_mode = #tpu.pipeline_mode<synchronous>, transform_indices = @transform_3, window_bounds = array<i64: 64, 32>}, {pipeline_mode = #tpu.pipeline_mode<synchronous>, transform_indices = @transform_4, window_bounds = array<i64: 1, 32>}, {transform_indices = @transform_5, window_bounds = array<i64: 16, 32>}]} {
    %c0 = arith.constant 0 : index
    %c0_0 = arith.constant 0 : index
    %0 = vector.load %arg1[%c0, %c0_0] : memref<16x32xf32, #tpu.memory_space<vmem>>, vector<16x32xf32>
    %c0_1 = arith.constant 0 : index
    %c0_2 = arith.constant 0 : index
    %1 = vector.load %arg2[%c0_1, %c0_2] : memref<32x64xf32, #tpu.memory_space<vmem>>, vector<32x64xf32>
    %cst = arith.constant dense<0.000000e+00> : vector<16x64xf32>
    %2 = tpu.matmul %0, %1, %cst {dimension_numbers = #tpu.dot_dimension_numbers<[1], [0], [0], [1], [0, 0, 1, 1], [], []>} : vector<16x32xf32>, vector<32x64xf32>, vector<16x64xf32> -> vector<16x64xf32>
    %c0_3 = arith.constant 0 : index
    %c0_4 = arith.constant 0 : index
    %3 = vector.load %arg3[%c0_3, %c0_4] : memref<1x64xf32, #tpu.memory_space<vmem>>, vector<1x64xf32>
    %4 = vector.broadcast %3 : vector<1x64xf32> to vector<16x64xf32>
    %5 = arith.addf %2, %4 : vector<16x64xf32>
    %cst_5 = arith.constant 0.000000e+00 : f32
    %6 = vector.broadcast %cst_5 : f32 to vector<16x64xf32>
    %7 = arith.maximumf %5, %6 : vector<16x64xf32>
    %c0_6 = arith.constant 0 : index
    %c0_7 = arith.constant 0 : index
    %8 = vector.load %arg4[%c0_6, %c0_7] : memref<64x32xf32, #tpu.memory_space<vmem>>, vector<64x32xf32>
    %cst_8 = arith.constant dense<0.000000e+00> : vector<16x32xf32>
    %9 = tpu.matmul %7, %8, %cst_8 {dimension_numbers = #tpu.dot_dimension_numbers<[1], [0], [0], [1], [0, 0, 1, 1], [], []>} : vector<16x64xf32>, vector<64x32xf32>, vector<16x32xf32> -> vector<16x32xf32>
    %c0_9 = arith.constant 0 : index
    %c0_10 = arith.constant 0 : index
    %10 = vector.load %arg5[%c0_9, %c0_10] : memref<1x32xf32, #tpu.memory_space<vmem>>, vector<1x32xf32>
    %11 = vector.broadcast %10 : vector<1x32xf32> to vector<16x32xf32>
    %12 = arith.addf %9, %11 : vector<16x32xf32>
    %c0_11 = arith.constant 0 : index
    %c0_12 = arith.constant 0 : index
    %13 = vector.load %arg6[%c0_11, %c0_12] : memref<16x32xf32, #tpu.memory_space<vmem>>, vector<16x32xf32>
    tpu.vector_store %arg6[%c0_11, %c0_12], %12 {strides = array<i32>} : memref<16x32xf32, #tpu.memory_space<vmem>>, vector<16x32xf32>,
    return
  }
  func.func @transform_0(%arg0: i32) -> (i32, i32) {
    %c0_i32 = arith.constant 0 : i32
    %c0_i32_0 = arith.constant 0 : i32
    return %arg0, %c0_i32 : i32, i32
  }
  func.func @transform_1(%arg0: i32) -> (i32, i32) {
    %c0_i32 = arith.constant 0 : i32
    %c0_i32_0 = arith.constant 0 : i32
    %c0_i32_1 = arith.constant 0 : i32
    return %c0_i32, %c0_i32_0 : i32, i32
  }
  func.func @transform_2(%arg0: i32) -> (i32, i32) {
    %c0_i32 = arith.constant 0 : i32
    %c0_i32_0 = arith.constant 0 : i32
    %c0_i32_1 = arith.constant 0 : i32
    return %c0_i32, %c0_i32_0 : i32, i32
  }
  func.func @transform_3(%arg0: i32) -> (i32, i32) {
    %c0_i32 = arith.constant 0 : i32
    %c0_i32_0 = arith.constant 0 : i32
    %c0_i32_1 = arith.constant 0 : i32
    return %c0_i32, %c0_i32_0 : i32, i32
  }
  func.func @transform_4(%arg0: i32) -> (i32, i32) {
    %c0_i32 = arith.constant 0 : i32
    %c0_i32_0 = arith.constant 0 : i32
    %c0_i32_1 = arith.constant 0 : i32
    return %c0_i32, %c0_i32_0 : i32, i32
  }
  func.func @transform_5(%arg0: i32) -> (i32, i32) {
    %c0_i32 = arith.constant 0 : i32
    %c0_i32_0 = arith.constant 0 : i32
    return %arg0, %c0_i32 : i32, i32
  }
}

</mosaic_0001>

<bundles_post_ra>
// kernel: tpu_custom_call.1
= control target key start
LH: loop header
LB: loop body
LE: loop exit
PB: predicated region body
PF: predicated region fallthrough
CT: control target
= control target key end

     0   :  { %vm34_vm0 = vcmask 261120   ;;  %s398_s0 = inlined_call_operand.vmem [shape: f32[16,32], index: 0, kind: input, shape index: {}]   ;;  %s399_s1 = inlined_call_operand.vmem [shape: f32[32,64], index: 1, kind: input, shape index: {}]   ;;  %s400_s2 = inlined_call_operand.vmem [shape: f32[1,64], index: 2, kind: input, shape index: {}]   ;;  %s401_s3 = inlined_call_operand.vmem [shape: f32[64,32], index: 3, kind: input, shape index: {}]   ;;  %s402_s4 = inlined_call_operand.vmem [shape: f32[1,32], index: 4, kind: input, shape index: {}]   ;;  %s403_s5 = inlined_call_operand.hbm [shape: f32[16,32], index: 5, kind: output, shape index: {}]  }
   0x1   :  { %v26_v0 = vld [vmem:[%s399_s1 + $0x18] sm:$0xff]  ;;  %v25_v1 = vld [vmem:[%s399_s1 + $0x10] sm:$0xff]  ;;  %v21_v2 = vld [vmem:[%s398_s0] sm:$0xff] }
   0x2   :  { %255 = vmatprep.subr.mxu0 %v26_v0  ;;  %v24_v3 = vld [vmem:[%s399_s1 + $0x8] sm:$0xff]  ;;  %263 = vmatprep.mubr.msk.f32.mxu0 %vm34_vm0, %v21_v2  ;;  %v125_v4 = vld [vmem:[%s401_s3 + $0x38] sm:$0xff]  ;;  %v124_v5 = vld [vmem:[%s401_s3 + $0x30] sm:$0xff] }
   0x3   :  { %256 = vmatpush3.msra.mxu0 %v26_v0  ;;  %266 = vmatprep.subr.mxu1 %v125_v4 }
   0x4   :  { %257 = vmatprep.subr.mxu0 %v25_v1 }
   0x5   :  { %10 = vsyncpa [#allocation3], 0  ;;  %258 = vmatpush3.msra.mxu0 %v25_v1  ;;  %v23_v6 = vld [vmem:[%s399_s1] sm:$0xff]  ;;  %267 = vmatpush3.msra.mxu1 %v125_v4  ;;  %v123_v7 = vld [vmem:[%s401_s3 + $0x28] sm:$0xff]  ;;  %vm133_vm1 = vcmask 523264  }
   0x6   :  { %259 = vmatprep.subr.mxu0 %v24_v3  ;;  %268 = vmatprep.subr.mxu1 %v124_v5  ;;  %v22_v8 = vld [vmem:[%s398_s0 + $0x8] sm:$0xff]  ;;  %v122_v9 = vld [vmem:[%s401_s3 + $0x20] sm:$0xff]  ;;  %v121_v10 = vld [vmem:[%s401_s3 + $0x18] sm:$0xff] }
   0x7   :  { %260 = vmatpush3.msra.mxu0 %v24_v3  ;;  %269 = vmatpush3.msra.mxu1 %v124_v5  ;;  %v120_v11 = vld [vmem:[%s401_s3 + $0x10] sm:$0xff]  ;;  %v119_v12 = vld [vmem:[%s401_s3 + $0x8] sm:$0xff]  ;;  %v118_v13 = vld [vmem:[%s401_s3] sm:$0xff]  ;;  %s310_s3 = smov [#allocation2]  }
   0x8   :  { %261 = vmatprep.subr.mxu0 %v23_v6  ;;  %270 = vmatprep.subr.mxu1 %v123_v7  ;;  %v233_v14 = vld [vmem:[%s400_s2] ss:$0 sm:$0xff]  ;;  %s222_s23 = sshll.u32 %s310_s3, 4  ;;  %s223_s23 = int_to_ptr.vmem [resolvable:$true] %s222_s23 }
   0x9   :  { %262 = vmatpush3.msra.mxu0 %v23_v6  ;;  %271 = vmatpush3.msra.mxu1 %v123_v7  ;;  %v236_v21 = vld [vmem:[%s402_s4] ss:$0 sm:$0xff]  ;;  %s288_s2 = scalar_lea.vmem %s223_s23, 256  ;;  %p293_p1 = scmp.lt.s32.totalorder %s223_s23, %s223_s23 }
   0xa   :  { %264 = vmatmul.mubr.msk.f32.vlgmr.msra.gmra.mxu0 %vm34_vm0, %v22_v8  ;;  %272 = vmatprep.subr.mxu1 %v122_v9  ;;  %p289_p0 = scmp.ne.s32.totalorder %s223_s23, %s288_s2  ;;  %p294_p2 = scmp.lt.s32.totalorder %s288_s2, %s288_s2 }
   0xb   :  { %273 = vmatpush3.msra.mxu1 %v122_v9 }
   0xc   :  { %274 = vmatprep.subr.mxu1 %v121_v10  ;;  %p295_p3 = por %p294_p2, %p293_p1 }
   0xd   :  { %275 = vmatpush3.msra.mxu1 %v121_v10 }
   0xe   :  { %276 = vmatprep.subr.mxu1 %v120_v11  ;;  %p296_p4 = pnand %p295_p3, %p289_p0 }
   0xf   :  { %277 = vmatpush3.msra.mxu1 %v120_v11 }
  0x10   :  { %278 = vmatprep.subr.mxu1 %v119_v12 }
  0x11   :  { %279 = vmatpush3.msra.mxu1 %v119_v12 }
  0x12   :  { %280 = vmatprep.subr.mxu1 %v118_v13 }
  0x13   :  { %281 = vmatpush3.msra.mxu1 %v118_v13 }
  0xca   :  { %v265_v15 = vpop.f32.mrf.mxu0 }
  0xcb   :  { %v113_v16 = vadd.f32 %v265_v15, %v233_v14 }
  0xcc   :  { %v107_v17 = vpop.f32.mrf.mxu0 }
  0xcd   :  { %v108_v18 = vadd.f32 %v233_v14, %v107_v17  ;;  %v117_v20 = vmax.f32 %v113_v16, 0.0 }
  0xcf   :  { %v116_v19 = vmax.f32 %v108_v18, 0.0 }
  0xd1   :  { %282 = vmatprep.mubr.msk.f32.mxu1 %vm133_vm1, %v116_v19 }
  0xd2   :  { %283 = vmatmul.mubr.msk.f32.vlgmr.msra.gmra.mxu1 %vm133_vm1, %v117_v20 }
 0x192   :  { %v284_v22 = vpop.f32.mrf.mxu1 }
 0x193   :  { %v212_v23 = vadd.f32 %v284_v22, %v236_v21 }
 0x194   :  { %v206_v24 = vpop.f32.mrf.mxu1 }
 0x195   :  { %216 = vst.msk [vmem:[#allocation2 + $0x8] sm:$0xff] %vm34_vm0, %v212_v23  ;;  %v207_v25 = vadd.f32 %v236_v21, %v206_v24 }
 0x197   :  { %215 = vst.msk [vmem:[#allocation2] sm:$0xff] %vm34_vm0, %v207_v25 }
 0x198   :  { %299 = shalt.err (!%p296_p4)
}
 0x199   :  { %s311_s24 = smov 128   ;;  %s312_s4 = smov 8  }
 0x19a   :  { %228 = dma.vmem_to_hbm [thread:$0]  %s223_s23, 256, %s403_s5, [#allocation3], %s311_s24, %s311_s24, %s312_s4  }
 0x19b   :  { %308 = dma.done.wait [#allocation3], 256  }
 0x19c   :  { %309 = vsyncadd [#allocation3], 4294967040 }
 0x19d   :  { %232 = vsyncpa [#allocation3], 1 }

</bundles_post_ra>
